<compile_context>
chip_gen: v7x
topology: tpu7x:2x2x1
jax: 0.10.0
libtpu: 0.0.40
codegen_flags: <defaults>
</compile_context>

<pallas_src>
import jax
import jax.numpy as jnp
from jax.experimental import pallas as pl
from jax.experimental.pallas import tpu as pltpu


def _identity_kernel(x_ref, o_ref):
    # Pure pass-through of the VMEM tile.
    o_ref[...] = x_ref[...]


def _sublane_pack(dtype) -> int:
    """Rows-per-vreg packing for the dtype (8 for 32-bit, 16 for 16-bit, 32 for 8-bit)."""
    itemsize = jnp.dtype(dtype).itemsize
    if itemsize >= 4:
        return 8
    if itemsize == 2:
        return 16
    return 32


def _vmem_budget():
    """Per-chip (scoped-VMEM limit, per-tile byte target)."""
    try:
        cap = int(pltpu.get_tpu_info().vmem_capacity_bytes)
    except Exception:
        cap = 64 * 1024 * 1024  # conservative fallback (v7x per-TC VMEM)
    # Leave headroom for internal scratch; never request more than 64 MiB scoped.
    vmem_limit = min((cap * 3) // 4, 64 * 1024 * 1024)     # v7x -> 48 MiB, v5e/v6e -> 64 MiB
    # Double-buffered in+out = 4 live tiles; keep ~1/6 of the limit per tile.
    tile_bytes = max(1 * 1024 * 1024, vmem_limit // 6)      # v7x -> 8 MiB, v5e/v6e -> ~10.6 MiB
    return vmem_limit, tile_bytes


def identity_passthrough(x: jax.Array) -> jax.Array:
    """Production path for Identity: no kernel, no HBM traffic."""
    return x


def identity(x: jax.Array) -> jax.Array:
    """Pallas implementation of Identity.forward: streaming copy, returns x's values."""
    orig_shape = x.shape
    dtype = x.dtype
    n = x.size

    if n == 0:
        return x  # nothing to copy

    itemsize = jnp.dtype(dtype).itemsize
    pack = _sublane_pack(dtype)
    vmem_limit, tile_bytes = _vmem_budget()
    cparams = pltpu.CompilerParams(
        # Independent tiles: lets v7x's two TensorCores split the copy
        # ("parallel" vs "arbitrary" is a no-op on single-TC v5e/v6e).
        dimension_semantics=("parallel",),
        vmem_limit_bytes=vmem_limit,
    )
    total_bytes = n * itemsize

    # Lane-dense flatten: pick the largest cols (multiple of 128) that divides n.
    cols = None
    for cand in (8192, 4096, 2048, 1024, 512, 256, 128):
        if n % cand == 0:
            cols = cand
            break

    if cols is None:
        # Element count not divisible by 128: tiled (1, n) copy.  Tile last dim is a
        # multiple of 128; only the ragged final block is masked.  Never a single
        # whole-array VMEM block (avoids compile-time VMEM OOM for large arrays).
        x2 = x.reshape(1, n)
        max_cols = max(128, (tile_bytes // itemsize) // 128 * 128)
        if total_bytes >= (2 << 20):
            # Force >= 2 grid steps so both v7x TensorCores stream.
            half_cols = max(128, (((n + 1) // 2) + 127) // 128 * 128)
            tile_cols = min(max_cols, half_cols)
        else:
            tile_cols = min(max_cols, n)
        if tile_cols >= n:
            tile_cols = n  # single full-extent block (small arrays only)
        grid = (pl.cdiv(n, tile_cols),)

        out2 = pl.pallas_call(
            _identity_kernel,
            out_shape=jax.ShapeDtypeStruct((1, n), dtype),
            grid_spec=pltpu.PrefetchScalarGridSpec(
                num_scalar_prefetch=0,
                grid=grid,
                in_specs=[pl.BlockSpec((1, tile_cols), lambda i: (0, i))],
                out_specs=pl.BlockSpec((1, tile_cols), lambda i: (0, i)),
            ),
            compiler_params=cparams,
        )(x2)
        return out2.reshape(orig_shape)

    rows = n // cols
    x2 = x.reshape(rows, cols)

    # Multi-MiB tiles, rounded to the dtype's sublane packing.
    target_rows = max(pack, tile_bytes // (cols * itemsize))
    target_rows = max(pack, (target_rows // pack) * pack)
    tile_rows = min(rows, target_rows)

    # Guarantee >= 2 grid steps for multi-MiB arrays (v7x megacore sharding).
    if total_bytes >= (2 << 20) and rows >= 2 * pack and tile_rows == rows:
        tile_rows = max(pack, ((rows // 2) // pack) * pack)

    # Prefer an even split near the target, but only accept divisors that keep the
    # tile at least half the target size; otherwise keep the ragged last block
    # (Pallas masks it) — tiny uniform tiles fall far off the HBM roofline.
    if rows % tile_rows != 0 and tile_rows > pack:
        min_rows = max(pack, tile_rows // 2)
        for cand_rows in range(tile_rows, min_rows - 1, -pack):
            if rows % cand_rows == 0:
                tile_rows = cand_rows
                break

    grid = (pl.cdiv(rows, tile_rows),)

    out2 = pl.pallas_call(
        _identity_kernel,
        out_shape=jax.ShapeDtypeStruct((rows, cols), dtype),
        grid_spec=pltpu.PrefetchScalarGridSpec(
            num_scalar_prefetch=0,
            grid=grid,
            in_specs=[pl.BlockSpec((tile_rows, cols), lambda i: (i, 0))],
            out_specs=pl.BlockSpec((tile_rows, cols), lambda i: (i, 0)),
        ),
        compiler_params=cparams,
    )(x2)

    return out2.reshape(orig_shape)


if __name__ == "__main__":
    key = jax.random.PRNGKey(0)
    # NCHW input: batch=2, channels=4, spatial=16x16
    x = jax.random.normal(key, (2, 4, 16, 16), dtype=jnp.float32)

    y = identity(x)
    jax.block_until_ready(y)

    assert y.shape == x.shape, (y.shape, x.shape)
    assert y.dtype == x.dtype, (y.dtype, x.dtype)
    assert bool(jnp.all(y == x)), "Identity output mismatch"

    print("KERNEL_OK")
</pallas_src>

<mosaic_0001>
module attributes {stable_mosaic.version = 11 : i64} {
  func.func @_identity_kernel(%arg0: i32, %arg1: memref<1x2048xf32, #tpu.memory_space<vmem>>, %arg2: memref<1x2048xf32, #tpu.memory_space<vmem>>) attributes {dimension_semantics = [#tpu.dimension_semantics<parallel>], iteration_bounds = array<i64: 1>, scalar_prefetch = 0 : i64, scratch_operands = 0 : i64, tpu.core_type = #tpu.core_type<tc>, window_params = [{transform_indices = @transform_0, window_bounds = array<i64: 1, 2048>}, {transform_indices = @transform_1, window_bounds = array<i64: 1, 2048>}]} {
    %c0 = arith.constant 0 : index
    %c0_0 = arith.constant 0 : index
    %0 = vector.load %arg1[%c0, %c0_0] : memref<1x2048xf32, #tpu.memory_space<vmem>>, vector<1x2048xf32>
    %c0_1 = arith.constant 0 : index
    %c0_2 = arith.constant 0 : index
    %1 = vector.load %arg2[%c0_1, %c0_2] : memref<1x2048xf32, #tpu.memory_space<vmem>>, vector<1x2048xf32>
    tpu.vector_store %arg2[%c0_1, %c0_2], %0 {strides = array<i32>} : memref<1x2048xf32, #tpu.memory_space<vmem>>, vector<1x2048xf32>,
    return
  }
  func.func @transform_0(%arg0: i32) -> (i32, i32) {
    %c0_i32 = arith.constant 0 : i32
    %c0_i32_0 = arith.constant 0 : i32
    return %arg0, %c0_i32 : i32, i32
  }
  func.func @transform_1(%arg0: i32) -> (i32, i32) {
    %c0_i32 = arith.constant 0 : i32
    %c0_i32_0 = arith.constant 0 : i32
    return %arg0, %c0_i32 : i32, i32
  }
}

</mosaic_0001>

<bundles_post_ra>
// kernel: tpu_custom_call.1
= control target key start
LH: loop header
LB: loop body
LE: loop exit
PB: predicated region body
PF: predicated region fallthrough
CT: control target
= control target key end

     0   :  { %6 = vsyncpa [#allocation3], 0  ;;  %s126_s0 = inlined_call_operand.hbm [shape: f32[1,2048], index: 0, kind: input, shape index: {}]   ;;  %s127_s1 = inlined_call_operand.hbm [shape: f32[1,2048], index: 1, kind: output, shape index: {}]  }
   0x1   :  { %7 = vsyncpa [#allocation4], 0  ;;  %s90_s6 = smov [#allocation2]   ;;  %s42_s10 = scalar_lea.hbm %s126_s0, 256 }
   0x2   :  { %s14_s7 = sshll.u32 %s90_s6, 4  ;;  %p43_p0 = scmp.ne.s32.totalorder %s126_s0, %s42_s10  ;;  %s15_s7 = int_to_ptr.vmem [resolvable:$true] %s14_s7 }
   0x3   :  { %p46_p1 = scmp.lt.u32.totalorder %s42_s10, %s126_s0 }
   0x5   :  { %p48_p2 = pnand %p46_p1, %p43_p0 }
   0x7   :  { %51 = shalt.err (!%p48_p2)
}
   0x8   :  { %s52_s15 = scalar_lea.vmem %s15_s7, 256  ;;  %p57_p4 = scmp.lt.s32.totalorder %s15_s7, %s15_s7 }
   0x9   :  { %p53_p3 = scmp.ne.s32.totalorder %s15_s7, %s52_s15  ;;  %p58_p5 = scmp.lt.s32.totalorder %s52_s15, %s52_s15 }
   0xb   :  { %p59_p6 = por %p58_p5, %p57_p4 }
   0xd   :  { %p60_p7 = pnand %p59_p6, %p53_p3 }
   0xf   :  { %63 = shalt.err (!%p60_p7)
}
  0x10   :  { %17 = dma.hbm_to_vmem [thread:$0]  %s126_s0, 256, %s15_s7, [#allocation3]  }
  0x11   :  { %86 = dma.done.wait [#allocation3], 256  }
  0x12   :  { %87 = vsyncadd [#allocation3], 4294967040  ;;  %s91_s18 = smov [#allocation5]   ;;  %v21_v0 = vld [vmem:[#allocation2] sm:$0xff]  ;;  %v22_v1 = vld [vmem:[#allocation2 + $0x8] sm:$0xff] }
  0x13   :  { %s31_s19 = sshll.u32 %s91_s18, 4  ;;  %23 = vst [vmem:[#allocation5] sm:$0xff] %v21_v0  ;;  %24 = vst [vmem:[#allocation5 + $0x8] sm:$0xff] %v22_v1  ;;  %s32_s19 = int_to_ptr.vmem [resolvable:$true] %s31_s19 }
  0x14   :  { %s64_s20 = scalar_lea.vmem %s32_s19, 256  ;;  %p69_p9 = scmp.lt.s32.totalorder %s32_s19, %s32_s19 }
  0x15   :  { %p65_p8 = scmp.ne.s32.totalorder %s32_s19, %s64_s20  ;;  %p70_p10 = scmp.lt.s32.totalorder %s64_s20, %s64_s20 }
  0x17   :  { %p71_p11 = por %p70_p10, %p69_p9 }
  0x19   :  { %p72_p12 = pnand %p71_p11, %p65_p8 }
  0x1b   :  { %75 = shalt.err (!%p72_p12)
}
  0x1c   :  { %s76_s0 = scalar_lea.hbm %s127_s1, 256 }
  0x1d   :  { %p77_p13 = scmp.ne.s32.totalorder %s127_s1, %s76_s0  ;;  %p80_p0 = scmp.lt.u32.totalorder %s76_s0, %s127_s1 }
  0x1f   :  { %p82_p1 = pnand %p80_p0, %p77_p13 }
  0x21   :  { %85 = shalt.err (!%p82_p1)
}
  0x22   :  { %34 = dma.vmem_to_hbm [thread:$0]  %s32_s19, 256, %s127_s1, [#allocation4]  }
  0x23   :  { %88 = dma.done.wait [#allocation4], 256  }
  0x24   :  { %89 = vsyncadd [#allocation4], 4294967040 }
  0x25   :  { %38 = vsyncpa [#allocation3], 1 }
  0x26   :  { %39 = vsyncpa [#allocation4], 1 }

</bundles_post_ra>
